<compile_context>
chip_gen: v7x
topology: tpu7x:2x2x1
jax: 0.10.0
libtpu: 0.0.40
codegen_flags: <defaults>
</compile_context>

<pallas_src>
import functools
import math

import jax
import jax.numpy as jnp
from jax.experimental import pallas as pl
from jax.experimental.pallas import tpu as pltpu

_LANE = 128
_NEG_INF = -1e30


def _round_up(x, m):
    return ((x + m - 1) // m) * m


def _pad2(x, rows, cols):
    return jnp.pad(x, ((0, rows - x.shape[0]), (0, cols - x.shape[1])))


# ------------------------------------------------------------------ capability probe
def _probe_kernel(a_ref, w_ref, o_ref, acc_ref):
    k = pl.program_id(1)

    @pl.when(k == 0)
    def _():
        acc_ref[...] = jnp.zeros_like(acc_ref)

    acc_ref[...] += a_ref[...]

    @pl.when(k == pl.num_programs(1) - 1)
    def _():
        o_ref[...] = acc_ref[...] + w_ref[...]


@functools.lru_cache(maxsize=1)
def _single_buffer_supported():
    """True iff pipeline_mode=pl.Buffered(1) (single-buffered grid-invariant inputs)
    lowers and runs on this backend; otherwise fall back to default double-buffering."""
    try:
        fn = pl.pallas_call(
            _probe_kernel,
            out_shape=jax.ShapeDtypeStruct((16, 128), jnp.float32),
            grid=(2, 2),
            in_specs=[
                pl.BlockSpec((8, 128), lambda i, j: (i, j)),
                pl.BlockSpec((8, 128), lambda i, j: (0, 0),
                             pipeline_mode=pl.Buffered(1)),
            ],
            out_specs=pl.BlockSpec((8, 128), lambda i, j: (i, 0)),
            scratch_shapes=[pltpu.VMEM((8, 128), jnp.float32)],
            compiler_params=pltpu.CompilerParams(
                dimension_semantics=("parallel", "arbitrary")),
        )
        jax.block_until_ready(fn(jnp.ones((16, 256), jnp.float32),
                                 jnp.ones((8, 128), jnp.float32)))
        return True
    except Exception:
        return False


def _tpu_config():
    """(vmem_capacity_bytes, per-chip default tile_m)."""
    vmem_bytes = 64 << 20                       # conservative default (v7x per-TC)
    try:
        info = pltpu.get_tpu_info()
        vmem_bytes = int(getattr(info, "vmem_capacity_bytes", vmem_bytes))
    except Exception:
        pass
    kind = ""
    try:
        kind = jax.devices()[0].device_kind.lower()
    except Exception:
        pass
    # v6e/v7x MXU is 2x256x256 -> 256-row tiles fill the systolic array and halve the
    # per-step pipeline overhead; v5e MXU is 4x128x128 -> 128 rows already saturate it
    # and keep f32 scratch / vreg pressure low.
    tile_m = 256 if any(t in kind for t in ("v6", "v7", "tpu7", "trillium")) else 128
    return vmem_bytes, tile_m


# --------------------------------------------------------------------------- kernels
def _sage_layer1_kernel(a_ref, dinv_ref, xk_ref, xrow_ref, w1_ref, b1_ref,
                        h1_ref, acc_ref):
    """h1[i] = relu( concat([(1/deg_i) * sum_k A[i,k]@X[k], X[i]]) @ [W1l; W1r] + b1 )."""
    k = pl.program_id(1)

    @pl.when(k == 0)
    def _():
        acc_ref[...] = jnp.zeros_like(acc_ref)

    # bf16 MXU matmul, f32 accumulation over the neighbour (contraction) axis.
    acc_ref[...] += jnp.dot(a_ref[...], xk_ref[...],
                            preferred_element_type=jnp.float32)

    @pl.when(k == pl.num_programs(1) - 1)
    def _():
        agg = (acc_ref[...] * dinv_ref[...]).astype(jnp.bfloat16)   # exact f32 mean
        op = jnp.concatenate([agg, xrow_ref[...]], axis=1)          # (tile_m, 2*Fin)
        h = jnp.dot(op, w1_ref[...], preferred_element_type=jnp.float32) + b1_ref[...]
        h1_ref[...] = jnp.maximum(h, 0.0).astype(jnp.bfloat16)


def _sage_layer2_kernel(skip, *refs):
    """Layer 2 + fc (+skip concat) + log_softmax for one row tile."""
    if skip:
        (a_ref, dinv_ref, hk_ref, hrow_ref, xrow_ref,
         w2_ref, b2_ref, wfc_ref, bfc_ref, out_ref, acc_ref) = refs
    else:
        (a_ref, dinv_ref, hk_ref, hrow_ref,
         w2_ref, b2_ref, wfc_ref, bfc_ref, out_ref, acc_ref) = refs
        xrow_ref = None

    k = pl.program_id(1)

    @pl.when(k == 0)
    def _():
        acc_ref[...] = jnp.zeros_like(acc_ref)

    acc_ref[...] += jnp.dot(a_ref[...], hk_ref[...],
                            preferred_element_type=jnp.float32)

    @pl.when(k == pl.num_programs(1) - 1)
    def _():
        agg = (acc_ref[...] * dinv_ref[...]).astype(jnp.bfloat16)
        op = jnp.concatenate([agg, hrow_ref[...]], axis=1)          # (tile_m, 2*H)
        h2 = jnp.dot(op, w2_ref[...], preferred_element_type=jnp.float32) + b2_ref[...]
        h2 = jnp.maximum(h2, 0.0).astype(jnp.bfloat16)
        fc_in = jnp.concatenate([h2, xrow_ref[...]], axis=1) if skip else h2
        # Padded classes carry a -1e30 bias so they vanish from the softmax.
        logits = (jnp.dot(fc_in, wfc_ref[...], preferred_element_type=jnp.float32)
                  + bfc_ref[...])
        m = jnp.max(logits, axis=1, keepdims=True)
        s = logits - m
        lse = jnp.log(jnp.sum(jnp.exp(s), axis=1, keepdims=True))
        out_ref[...] = s - lse


# --------------------------------------------------------------------------- glue
def build_graph_operands(edge_index, n_pad):
    """bf16 unnormalized count-adjacency + f32 inverse in-degree, padded to n_pad.
    (bf16 counts are exact up to 256 parallel edges per node pair.)"""
    src, dst = edge_index[0], edge_index[1]
    counts = jnp.zeros((n_pad, n_pad), jnp.float32).at[dst, src].add(1.0)
    deg = jnp.sum(counts, axis=1, keepdims=True)
    dinv = 1.0 / jnp.maximum(deg, 1.0)                              # f32 (n_pad, 1)
    return counts.astype(jnp.bfloat16), dinv


def init_params(key, in_channels, hidden_channels, out_channels, num_classes,
                skip=False):
    """Synthetic parameters (PyTorch Linear W is (out,in); stored transposed here)."""
    ks = jax.random.split(key, 8)

    def lin(k, fan_in, fan_out):
        bound = 1.0 / jnp.sqrt(fan_in)
        return jax.random.uniform(k, (fan_in, fan_out), jnp.float32, -bound, bound)

    fc_in = out_channels + in_channels if skip else out_channels
    return dict(
        w1l=lin(ks[0], in_channels, hidden_channels),
        b1l=jax.random.uniform(ks[1], (1, hidden_channels), jnp.float32,
                               -1.0 / jnp.sqrt(in_channels),
                               1.0 / jnp.sqrt(in_channels)),
        w1r=lin(ks[2], in_channels, hidden_channels),
        w2l=lin(ks[3], hidden_channels, out_channels),
        b2l=jax.random.uniform(ks[4], (1, out_channels), jnp.float32,
                               -1.0 / jnp.sqrt(hidden_channels),
                               1.0 / jnp.sqrt(hidden_channels)),
        w2r=lin(ks[5], hidden_channels, out_channels),
        wfc=lin(ks[6], fc_in, num_classes),
        bfc=jax.random.uniform(ks[7], (1, num_classes), jnp.float32,
                               -1.0 / jnp.sqrt(fc_in), 1.0 / jnp.sqrt(fc_in)),
    )


def sagenet_forward(x, edge_index, params, skip=False, tile_m=None, tile_k=128):
    """Inference-mode forward pass (dropout is identity when training=False)."""
    n, fin = x.shape
    hid = params["w1l"].shape[1]
    out_ch = params["w2l"].shape[1]
    k = params["wfc"].shape[1]

    fin_p = _round_up(fin, _LANE)
    hid_p = _round_up(hid, _LANE)
    out_p = _round_up(out_ch, _LANE)
    k_p = _round_up(k, _LANE)
    fc_rows = out_p + fin_p if skip else out_p

    single_buf = _single_buffer_supported()
    wbuf = 1 if single_buf else 2
    vmem_bytes, auto_tile_m = _tpu_config()

    # ---- explicit per-step VMEM budget (drives tile_m fallback + vmem_limit) ----
    def layer_vmem(tm, f_in, f_out, w_shapes):
        b = 2 * tm * tile_k * 2                 # A tile (double-buffered, bf16)
        b += 2 * tile_k * f_in * 2              # neighbour-feature contraction block
        b += 2 * tm * f_in * 2                  # self-feature row tile
        b += 2 * tm * 4                         # 1/deg tile
        b += 2 * tm * f_out * 4                 # output tile (f32 upper bound)
        b += tm * f_in * 4                      # f32 accumulator scratch
        b += 2 * tm * (f_in + f_out) * 4        # f32 temporaries / headroom
        for r, c in w_shapes:
            b += wbuf * r * c * 2               # grid-invariant operands
        return b

    def max_vmem(tm):
        w1_shapes = [(2 * fin_p, hid_p), (1, hid_p)]
        w2_shapes = [(2 * hid_p, out_p), (1, out_p), (fc_rows, k_p), (1, k_p)]
        if skip:
            w2_shapes.append((tm, fin_p))       # extra x self-row tile
        return max(layer_vmem(tm, fin_p, hid_p, w1_shapes),
                   layer_vmem(tm, hid_p, max(out_p, k_p), w2_shapes))

    if tile_m is None:
        tile_m = auto_tile_m
        # Respect the per-chip budget (decisive on v7x's 64 MiB/TC VMEM).
        while tile_m > 128 and max_vmem(tile_m) > int(0.45 * vmem_bytes):
            tile_m //= 2
    assert tile_m >= 16 and tile_m % 16 == 0, "bf16 blocks need tile_m % 16 == 0"
    assert tile_k % _LANE == 0, "A-tile lane dim must be a multiple of 128"

    vmem_limit = int(min(0.9 * vmem_bytes,
                         max(32 << 20, 2 * max_vmem(tile_m) + (8 << 20))))

    np_ = _round_up(n, math.lcm(tile_m, tile_k))

    # ---- padded / packed operands ----
    a_bf16, dinv = build_graph_operands(edge_index, np_)
    x_p = _pad2(x, np_, fin_p).astype(jnp.bfloat16)

    w1 = jnp.concatenate([_pad2(params["w1l"], fin_p, hid_p),
                          _pad2(params["w1r"], fin_p, hid_p)],
                         axis=0).astype(jnp.bfloat16)               # [W1l; W1r]
    b1 = _pad2(params["b1l"], 1, hid_p)
    w2 = jnp.concatenate([_pad2(params["w2l"], hid_p, out_p),
                          _pad2(params["w2r"], hid_p, out_p)],
                         axis=0).astype(jnp.bfloat16)               # [W2l; W2r]
    b2 = _pad2(params["b2l"], 1, out_p)
    if skip:
        wfc = jnp.concatenate([_pad2(params["wfc"][:out_ch], out_p, k_p),
                               _pad2(params["wfc"][out_ch:], fin_p, k_p)],
                              axis=0).astype(jnp.bfloat16)          # [wfc_h; wfc_x]
    else:
        wfc = _pad2(params["wfc"], out_p, k_p).astype(jnp.bfloat16)
    bfc = jnp.full((1, k_p), _NEG_INF, jnp.float32).at[:, :k].set(params["bfc"])

    grid = (np_ // tile_m, np_ // tile_k)
    cparams = pltpu.CompilerParams(
        dimension_semantics=("parallel", "arbitrary"),
        vmem_limit_bytes=vmem_limit,
    )

    def const_spec(shape):
        # Grid-invariant operand: single-buffer it when the backend supports it.
        if single_buf:
            return pl.BlockSpec(shape, lambda i, j: (0, 0),
                                pipeline_mode=pl.Buffered(1))
        return pl.BlockSpec(shape, lambda i, j: (0, 0))

    # ---- layer 1: h1 = relu(concat([mean_agg(x), x]) @ [W1l; W1r] + b1) ----
    flops1 = int(2 * np_ * np_ * fin_p + 4 * np_ * fin_p * hid_p)
    bytes1 = int(2 * np_ * np_ + (np_ // tile_m + 1) * np_ * fin_p * 2
                 + 4 * fin_p * hid_p + np_ * hid_p * 2 + 4 * np_)
    h1 = pl.pallas_call(
        _sage_layer1_kernel,
        out_shape=jax.ShapeDtypeStruct((np_, hid_p), jnp.bfloat16),
        grid=grid,
        in_specs=[
            pl.BlockSpec((tile_m, tile_k), lambda i, j: (i, j)),    # A tile
            pl.BlockSpec((tile_m, 1), lambda i, j: (i, 0)),         # 1/deg rows
            pl.BlockSpec((tile_k, fin_p), lambda i, j: (j, 0)),     # X contraction block
            pl.BlockSpec((tile_m, fin_p), lambda i, j: (i, 0)),     # X self rows
            const_spec((2 * fin_p, hid_p)),                         # [W1l; W1r]
            const_spec((1, hid_p)),                                 # b1
        ],
        out_specs=pl.BlockSpec((tile_m, hid_p), lambda i, j: (i, 0)),
        scratch_shapes=[pltpu.VMEM((tile_m, fin_p), jnp.float32)],
        compiler_params=cparams,
        cost_estimate=pl.CostEstimate(flops=flops1, transcendentals=0,
                                      bytes_accessed=bytes1),
    )(a_bf16, dinv, x_p, x_p, w1, b1)

    # ---- layer 2 + fc (+skip) + log_softmax ----
    flops2 = int(2 * np_ * np_ * hid_p + 4 * np_ * hid_p * out_p
                 + 2 * np_ * fc_rows * k_p)
    bytes2 = int(2 * np_ * np_ + (np_ // tile_m + 1) * np_ * hid_p * 2
                 + (np_ * fin_p * 2 if skip else 0)
                 + 4 * hid_p * out_p + 2 * fc_rows * k_p + 4 * np_ * k_p + 4 * np_)

    in_specs2 = [
        pl.BlockSpec((tile_m, tile_k), lambda i, j: (i, j)),        # A tile
        pl.BlockSpec((tile_m, 1), lambda i, j: (i, 0)),             # 1/deg rows
        pl.BlockSpec((tile_k, hid_p), lambda i, j: (j, 0)),         # h1 contraction block
        pl.BlockSpec((tile_m, hid_p), lambda i, j: (i, 0)),         # h1 self rows
    ]
    operands2 = [a_bf16, dinv, h1, h1]
    if skip:  # x only enters the layer-2 call on the skip path (no dead inputs).
        in_specs2.append(pl.BlockSpec((tile_m, fin_p), lambda i, j: (i, 0)))
        operands2.append(x_p)
    in_specs2 += [
        const_spec((2 * hid_p, out_p)),                             # [W2l; W2r]
        const_spec((1, out_p)),                                     # b2
        const_spec((fc_rows, k_p)),                                 # wfc (stacked if skip)
        const_spec((1, k_p)),                                       # bfc (+class mask)
    ]
    operands2 += [w2, b2, wfc, bfc]

    out_full = pl.pallas_call(
        functools.partial(_sage_layer2_kernel, skip),
        out_shape=jax.ShapeDtypeStruct((np_, k_p), jnp.float32),
        grid=grid,
        in_specs=in_specs2,
        out_specs=pl.BlockSpec((tile_m, k_p), lambda i, j: (i, 0)),
        scratch_shapes=[pltpu.VMEM((tile_m, hid_p), jnp.float32)],
        compiler_params=cparams,
        cost_estimate=pl.CostEstimate(flops=flops2, transcendentals=int(np_ * k_p),
                                      bytes_accessed=bytes2),
    )(*operands2)

    return out_full[:n, :k]


def _reference_forward(x, edge_index, params, skip):
    """Pure-JAX f32 reference (mirrors the PyTorch module in eval mode)."""
    n = x.shape[0]
    src, dst = edge_index[0], edge_index[1]
    a = jnp.zeros((n, n), jnp.float32).at[dst, src].add(1.0)
    a = a / jnp.maximum(jnp.sum(a, axis=1, keepdims=True), 1.0)
    h1 = jnp.maximum((a @ x) @ params["w1l"] + params["b1l"] + x @ params["w1r"], 0.0)
    h2 = jnp.maximum((a @ h1) @ params["w2l"] + params["b2l"] + h1 @ params["w2r"], 0.0)
    feat = jnp.concatenate([h2, x], axis=1) if skip else h2
    logits = feat @ params["wfc"] + params["bfc"]
    return jax.nn.log_softmax(logits, axis=1)


if __name__ == "__main__":
    # Small shapes consistent with the module's forward.
    N = 200
    IN_CH = 12
    HIDDEN = 32
    OUT_CH = 32
    NUM_CLASSES = 7
    TILE_M = 16      # multiple of 16 (bf16 packing); small so the demo runs a
    TILE_K = 128     # multi-step (parallel x arbitrary) grid.  Production: tile_m=None
                     # auto-picks 128 (v5e) / 256 (v6e, v7x).

    key = jax.random.PRNGKey(0)
    k_x, k_par = jax.random.split(key)
    x = jax.random.normal(k_x, (N, IN_CH), jnp.float32)

    # Deterministic edge_index (2, E): bidirectional ring + a few chords.
    src = list(range(N)) + [(i + 1) % N for i in range(N)] + [0, 3, 7, 11, 50, 123]
    dst = [(i + 1) % N for i in range(N)] + list(range(N)) + [8, 12, 2, 5, 150, 60]
    edge_index = jnp.array([src, dst], dtype=jnp.int32)

    for skip in (False, True):
        params = init_params(k_par, IN_CH, HIDDEN, OUT_CH, NUM_CLASSES, skip=skip)
        out = sagenet_forward(x, edge_index, params, skip=skip,
                              tile_m=TILE_M, tile_k=TILE_K)
        out = jax.block_until_ready(out)

        assert out.shape == (N, NUM_CLASSES)
        # log_softmax rows must exp-sum to ~1
        assert jnp.allclose(jnp.sum(jnp.exp(out), axis=1), 1.0, atol=1e-3)
        # bf16-matmul kernel vs f32 reference (loose tolerance for bf16 rounding)
        ref = _reference_forward(x, edge_index, params, skip)
        err = float(jnp.max(jnp.abs(out - ref)))
        assert err < 0.15, f"skip={skip} max abs err {err}"
    print("KERNEL_OK")
</pallas_src>

<mosaic_0001>
module attributes {stable_mosaic.version = 11 : i64} {
  func.func @_probe_kernel(%arg0: i32, %arg1: i32, %arg2: memref<8x128xf32, #tpu.memory_space<vmem>>, %arg3: memref<8x128xf32, #tpu.memory_space<vmem>>, %arg4: memref<8x128xf32, #tpu.memory_space<vmem>>, %arg5: memref<8x128xf32, #tpu.memory_space<vmem>>) attributes {dimension_semantics = [#tpu.dimension_semantics<parallel>, #tpu.dimension_semantics<arbitrary>], iteration_bounds = array<i64: 2, 2>, scalar_prefetch = 0 : i64, scratch_operands = 1 : i64, tpu.core_type = #tpu.core_type<tc>, window_params = [{transform_indices = @transform_0, window_bounds = array<i64: 8, 128>}, {pipeline_mode = #tpu.pipeline_mode<synchronous>, transform_indices = @transform_1, window_bounds = array<i64: 8, 128>}, {transform_indices = @transform_2, window_bounds = array<i64: 8, 128>}]} {
    %c0_i32 = arith.constant 0 : i32
    %0 = arith.cmpi eq, %arg1, %c0_i32 : i32
    %1 = arith.extui %0 : i1 to i32
    %c0_i32_0 = arith.constant 0 : i32
    %2 = arith.cmpi ne, %1, %c0_i32_0 : i32
    scf.if %2 {
      %cst = arith.constant 0.000000e+00 : f32
      %10 = vector.broadcast %cst : f32 to vector<8x128xf32>
      %c0_7 = arith.constant 0 : index
      %c0_8 = arith.constant 0 : index
      %11 = vector.load %arg5[%c0_7, %c0_8] : memref<8x128xf32, #tpu.memory_space<vmem>>, vector<8x128xf32>
      tpu.vector_store %arg5[%c0_7, %c0_8], %10 {strides = array<i32>} : memref<8x128xf32, #tpu.memory_space<vmem>>, vector<8x128xf32>,
    } else {
    }
    %c0 = arith.constant 0 : index
    %c0_1 = arith.constant 0 : index
    %3 = vector.load %arg5[%c0, %c0_1] : memref<8x128xf32, #tpu.memory_space<vmem>>, vector<8x128xf32>
    %c0_2 = arith.constant 0 : index
    %c0_3 = arith.constant 0 : index
    %4 = vector.load %arg2[%c0_2, %c0_3] : memref<8x128xf32, #tpu.memory_space<vmem>>, vector<8x128xf32>
    %5 = arith.addf %3, %4 : vector<8x128xf32>
    %c0_4 = arith.constant 0 : index
    %c0_5 = arith.constant 0 : index
    %6 = vector.load %arg5[%c0_4, %c0_5] : memref<8x128xf32, #tpu.memory_space<vmem>>, vector<8x128xf32>
    tpu.vector_store %arg5[%c0_4, %c0_5], %5 {strides = array<i32>} : memref<8x128xf32, #tpu.memory_space<vmem>>, vector<8x128xf32>,
    %c1_i32 = arith.constant 1 : i32
    %7 = arith.cmpi eq, %arg1, %c1_i32 : i32
    %8 = arith.extui %7 : i1 to i32
    %c0_i32_6 = arith.constant 0 : i32
    %9 = arith.cmpi ne, %8, %c0_i32_6 : i32
    scf.if %9 {
      %c0_7 = arith.constant 0 : index
      %c0_8 = arith.constant 0 : index
      %10 = vector.load %arg5[%c0_7, %c0_8] : memref<8x128xf32, #tpu.memory_space<vmem>>, vector<8x128xf32>
      %c0_9 = arith.constant 0 : index
      %c0_10 = arith.constant 0 : index
      %11 = vector.load %arg3[%c0_9, %c0_10] : memref<8x128xf32, #tpu.memory_space<vmem>>, vector<8x128xf32>
      %12 = arith.addf %10, %11 : vector<8x128xf32>
      %c0_11 = arith.constant 0 : index
      %c0_12 = arith.constant 0 : index
      %13 = vector.load %arg4[%c0_11, %c0_12] : memref<8x128xf32, #tpu.memory_space<vmem>>, vector<8x128xf32>
      tpu.vector_store %arg4[%c0_11, %c0_12], %12 {strides = array<i32>} : memref<8x128xf32, #tpu.memory_space<vmem>>, vector<8x128xf32>,
    } else {
    }
    return
  }
  func.func @transform_0(%arg0: i32, %arg1: i32) -> (i32, i32) {
    %c0_i32 = arith.constant 0 : i32
    return %arg0, %arg1 : i32, i32
  }
  func.func @transform_1(%arg0: i32, %arg1: i32) -> (i32, i32) {
    %c0_i32 = arith.constant 0 : i32
    %c0_i32_0 = arith.constant 0 : i32
    %c0_i32_1 = arith.constant 0 : i32
    return %c0_i32, %c0_i32_0 : i32, i32
  }
  func.func @transform_2(%arg0: i32, %arg1: i32) -> (i32, i32) {
    %c0_i32 = arith.constant 0 : i32
    %c0_i32_0 = arith.constant 0 : i32
    return %arg0, %c0_i32 : i32, i32
  }
}

module attributes {stable_mosaic.version = 11 : i64} {
  func.func @_sage_layer1_kernel(%arg0: i32, %arg1: i32, %arg2: memref<16x128xbf16, #tpu.memory_space<vmem>>, %arg3: memref<16x1xf32, #tpu.memory_space<vmem>>, %arg4: memref<128x128xbf16, #tpu.memory_space<vmem>>, %arg5: memref<16x128xbf16, #tpu.memory_space<vmem>>, %arg6: memref<256x128xbf16, #tpu.memory_space<vmem>>, %arg7: memref<1x128xf32, #tpu.memory_space<vmem>>, %arg8: memref<16x128xbf16, #tpu.memory_space<vmem>>, %arg9: memref<16x128xf32, #tpu.memory_space<vmem>>) attributes {dimension_semantics = [#tpu.dimension_semantics<parallel>, #tpu.dimension_semantics<arbitrary>], iteration_bounds = array<i64: 16, 2>, scalar_prefetch = 0 : i64, scratch_operands = 1 : i64, tpu.core_type = #tpu.core_type<tc>, window_params = [{transform_indices = @transform_0, window_bounds = array<i64: 16, 128>}, {transform_indices = @transform_1, window_bounds = array<i64: 16, 1>}, {transform_indices = @transform_2, window_bounds = array<i64: 128, 128>}, {transform_indices = @transform_3, window_bounds = array<i64: 16, 128>}, {pipeline_mode = #tpu.pipeline_mode<synchronous>, transform_indices = @transform_4, window_bounds = array<i64: 256, 128>}, {pipeline_mode = #tpu.pipeline_mode<synchronous>, transform_indices = @transform_5, window_bounds = array<i64: 1, 128>}, {transform_indices = @transform_6, window_bounds = array<i64: 16, 128>}]} {
    %c0_i32 = arith.constant 0 : i32
    %0 = arith.cmpi eq, %arg1, %c0_i32 : i32
    %1 = arith.extui %0 : i1 to i32
    %c0_i32_0 = arith.constant 0 : i32
    %2 = arith.cmpi ne, %1, %c0_i32_0 : i32
    scf.if %2 {
      %cst_9 = arith.constant 0.000000e+00 : f32
      %12 = vector.broadcast %cst_9 : f32 to vector<16x128xf32>
      %c0_10 = arith.constant 0 : index
      %c0_11 = arith.constant 0 : index
      %13 = vector.load %arg9[%c0_10, %c0_11] : memref<16x128xf32, #tpu.memory_space<vmem>>, vector<16x128xf32>
      tpu.vector_store %arg9[%c0_10, %c0_11], %12 {strides = array<i32>} : memref<16x128xf32, #tpu.memory_space<vmem>>, vector<16x128xf32>,
    } else {
    }
    %c0 = arith.constant 0 : index
    %c0_1 = arith.constant 0 : index
    %3 = vector.load %arg9[%c0, %c0_1] : memref<16x128xf32, #tpu.memory_space<vmem>>, vector<16x128xf32>
    %c0_2 = arith.constant 0 : index
    %c0_3 = arith.constant 0 : index
    %4 = vector.load %arg2[%c0_2, %c0_3] : memref<16x128xbf16, #tpu.memory_space<vmem>>, vector<16x128xbf16>
    %c0_4 = arith.constant 0 : index
    %c0_5 = arith.constant 0 : index
    %5 = vector.load %arg4[%c0_4, %c0_5] : memref<128x128xbf16, #tpu.memory_space<vmem>>, vector<128x128xbf16>
    %cst = arith.constant dense<0.000000e+00> : vector<16x128xf32>
    %6 = tpu.matmul %4, %5, %cst {dimension_numbers = #tpu.dot_dimension_numbers<[1], [0], [0], [1], [0, 0, 1, 1], [], []>} : vector<16x128xbf16>, vector<128x128xbf16>, vector<16x128xf32> -> vector<16x128xf32>
    %7 = arith.addf %3, %6 : vector<16x128xf32>
    %c0_6 = arith.constant 0 : index
    %c0_7 = arith.constant 0 : index
    %8 = vector.load %arg9[%c0_6, %c0_7] : memref<16x128xf32, #tpu.memory_space<vmem>>, vector<16x128xf32>
    tpu.vector_store %arg9[%c0_6, %c0_7], %7 {strides = array<i32>} : memref<16x128xf32, #tpu.memory_space<vmem>>, vector<16x128xf32>,
    %c1_i32 = arith.constant 1 : i32
    %9 = arith.cmpi eq, %arg1, %c1_i32 : i32
    %10 = arith.extui %9 : i1 to i32
    %c0_i32_8 = arith.constant 0 : i32
    %11 = arith.cmpi ne, %10, %c0_i32_8 : i32
    scf.if %11 {
      %c0_9 = arith.constant 0 : index
      %c0_10 = arith.constant 0 : index
      %12 = vector.load %arg9[%c0_9, %c0_10] : memref<16x128xf32, #tpu.memory_space<vmem>>, vector<16x128xf32>
      %c0_11 = arith.constant 0 : index
      %c0_12 = arith.constant 0 : index
      %13 = vector.load %arg3[%c0_11, %c0_12] : memref<16x1xf32, #tpu.memory_space<vmem>>, vector<16x1xf32>
      %14 = vector.broadcast %13 : vector<16x1xf32> to vector<16x128xf32>
      %15 = arith.mulf %12, %14 : vector<16x128xf32>
      %16 = arith.truncf %15 : vector<16x128xf32> to vector<16x128xbf16>
      %c0_13 = arith.constant 0 : index
      %c0_14 = arith.constant 0 : index
      %17 = vector.load %arg5[%c0_13, %c0_14] : memref<16x128xbf16, #tpu.memory_space<vmem>>, vector<16x128xbf16>
      %18 = tpu.concatenate %16, %17 in 1 : vector<16x128xbf16>, vector<16x128xbf16> -> vector<16x256xbf16>
      %c0_15 = arith.constant 0 : index
      %c0_16 = arith.constant 0 : index
      %19 = vector.load %arg6[%c0_15, %c0_16] : memref<256x128xbf16, #tpu.memory_space<vmem>>, vector<256x128xbf16>
      %cst_17 = arith.constant dense<0.000000e+00> : vector<16x128xf32>
      %20 = tpu.matmul %18, %19, %cst_17 {dimension_numbers = #tpu.dot_dimension_numbers<[1], [0], [0], [1], [0, 0, 1, 1], [], []>} : vector<16x256xbf16>, vector<256x128xbf16>, vector<16x128xf32> -> vector<16x128xf32>
      %c0_18 = arith.constant 0 : index
      %c0_19 = arith.constant 0 : index
      %21 = vector.load %arg7[%c0_18, %c0_19] : memref<1x128xf32, #tpu.memory_space<vmem>>, vector<1x128xf32>
      %22 = vector.broadcast %21 : vector<1x128xf32> to vector<16x128xf32>
      %23 = arith.addf %20, %22 : vector<16x128xf32>
      %cst_20 = arith.constant 0.000000e+00 : f32
      %24 = vector.broadcast %cst_20 : f32 to vector<16x128xf32>
      %25 = arith.maximumf %23, %24 : vector<16x128xf32>
      %26 = arith.truncf %25 : vector<16x128xf32> to vector<16x128xbf16>
      %c0_21 = arith.constant 0 : index
      %c0_22 = arith.constant 0 : index
      %27 = vector.load %arg8[%c0_21, %c0_22] : memref<16x128xbf16, #tpu.memory_space<vmem>>, vector<16x128xbf16>
      tpu.vector_store %arg8[%c0_21, %c0_22], %26 {strides = array<i32>} : memref<16x128xbf16, #tpu.memory_space<vmem>>, vector<16x128xbf16>,
    } else {
    }
    return
  }
  func.func @transform_0(%arg0: i32, %arg1: i32) -> (i32, i32) {
    %c0_i32 = arith.constant 0 : i32
    return %arg0, %arg1 : i32, i32
  }
  func.func @transform_1(%arg0: i32, %arg1: i32) -> (i32, i32) {
    %c0_i32 = arith.constant 0 : i32
    %c0_i32_0 = arith.constant 0 : i32
    return %arg0, %c0_i32 : i32, i32
  }
  func.func @transform_2(%arg0: i32, %arg1: i32) -> (i32, i32) {
    %c0_i32 = arith.constant 0 : i32
    %c0_i32_0 = arith.constant 0 : i32
    return %arg1, %c0_i32 : i32, i32
  }
  func.func @transform_3(%arg0: i32, %arg1: i32) -> (i32, i32) {
    %c0_i32 = arith.constant 0 : i32
    %c0_i32_0 = arith.constant 0 : i32
    return %arg0, %c0_i32 : i32, i32
  }
  func.func @transform_4(%arg0: i32, %arg1: i32) -> (i32, i32) {
    %c0_i32 = arith.constant 0 : i32
    %c0_i32_0 = arith.constant 0 : i32
    %c0_i32_1 = arith.constant 0 : i32
    return %c0_i32, %c0_i32_0 : i32, i32
  }
  func.func @transform_5(%arg0: i32, %arg1: i32) -> (i32, i32) {
    %c0_i32 = arith.constant 0 : i32
    %c0_i32_0 = arith.constant 0 : i32
    %c0_i32_1 = arith.constant 0 : i32
    return %c0_i32, %c0_i32_0 : i32, i32
  }
  func.func @transform_6(%arg0: i32, %arg1: i32) -> (i32, i32) {
    %c0_i32 = arith.constant 0 : i32
    %c0_i32_0 = arith.constant 0 : i32
    return %arg0, %c0_i32 : i32, i32
  }
}

</mosaic_0001>

<bundles_post_ra>
// kernel: tpu_custom_call.1
= control target key start
LH: loop header
LB: loop body
LE: loop exit
PB: predicated region body
PF: predicated region fallthrough
CT: control target
= control target key end

     0   :  { %s903_s0 = inlined_call_operand.hbm [shape: f32[16,256], index: 0, kind: input, shape index: {}]   ;;  %s904_s1 = inlined_call_operand.hbm [shape: f32[8,128], index: 1, kind: input, shape index: {}]   ;;  %s905_s2 = inlined_call_operand.hbm [shape: f32[16,128], index: 2, kind: output, shape index: {}]  }
   0x1   :  { %917 = sst [smem:[#allocation17_spill]] %s904_s1 }
   0x2   :  { %918 = sst [smem:[#allocation18_spill]] %s905_s2 }
   0x3   :  { %7 = vsyncpa [#allocation4], 0 }
   0x4   :  { %9 = vsyncpa [#allocation4 + $0x1], 0 }
   0x5   :  { %10 = vsyncpa [#allocation7], 0 }
   0x6   :  { %11 = vsyncpa [#allocation5], 0 }
   0x7   :  { %13 = vsyncpa [#allocation5 + $0x1], 0  ;;  %s649_s9 = smov 0   ;;  %s651_s10 = smov 0  }
   0x8   :  { %s653_s11 = smov 0   ;;  %s655_s12 = smov 0  }
   0x9   :  { %s657_s13 = smov 0   ;;  %s659_s14 = smov 0  }
   0xa   :  { %s661_s15 = smov 0   ;;  %s663_s16 = smov 0  }
   0xb   :  { %s665_s17 = smov 0   ;;  %s667_s18 = smov 0  }
   0xc   :  { %s669_s19 = smov 0  }
   0xd LB: > { %919 = sst [smem:[#allocation12_spill]] %s588_s9  ;;  %s312_s20 = sadd.s32 4294967295, %s628_s19   ;;  %s628_s19 = sphi %s669_s19, %s19_s19   ;;  %s624_s18 = sphi %s667_s18, %s953_s18   ;;  %s620_s17 = sphi %s665_s17, %s952_s17   ;;  %s616_s16 = sphi %s663_s16, %s951_s16   ;;  %s612_s15 = sphi %s661_s15, %s950_s15   ;;  %s608_s14 = sphi %s659_s14, %s949_s14   ;;  %s604_s13 = sphi %s657_s13, %s948_s13   ;;  %s600_s12 = sphi %s655_s12, %s947_s12   ;;  %s596_s11 = sphi %s653_s11, %s946_s11   ;;  %s592_s10 = sphi %s651_s10, %s945_s10   ;;  %s588_s9 = sphi %s649_s9, %s944_s9  }
   0xe   : > { %920 = sst [smem:[#allocation13_spill]] %s616_s16  ;;  %s313_s21 = sadd.s32 4294967294, %s628_s19  }
   0xf   : > { %p53_p0 = scmp.ne.s32.totalorder %s604_s13, %s600_s12  ;;  %p705_p1 = scmp.eq.s32.totalorder %s312_s20, 0 }
  0x10   : > { %s87_s23 = sadd.s32 1, %s596_s11  ;;  %p97_p2 = scmp.ne.s32.totalorder %s596_s11, %s592_s10 }
  0x11   : > { %s921_s22 = scalar_select %p705_p1, 1, 0 }
  0x12   : > { %p714_p3 = por %p705_p1, %p53_p0  ;;  %p98_p4 = scmp.eq.s32.totalorder %s312_s20, 3 }
  0x13   : > { %p103_p5 = scmp.ne.s32.totalorder %s592_s10, %s588_s9  ;;  %p104_p6 = scmp.eq.s32.totalorder %s313_s21, 3 }
  0x14   : > { %s922_s24 = scalar_select %p714_p3, 1, 0 }
  0x15   : > { %p720_p7 = por %p98_p4, %p97_p2  ;;  %p314_p8 = scmp.ge.s32.totalorder %s628_s19, 1 }
  0x16   : > { %p725_p9 = por %p104_p6, %p103_p5  ;;  %p111_p10 = scmp.lt.s32.totalorder %s628_s19, 5 }
  0x17   : > { %s923_s25 = scalar_select %p720_p7, 1, 0 }
  0x18   : > { %s925_s26 = scalar_select %p725_p9, 1, 0 }
  0x19   : > { %924 = sst [smem:[#allocation14_spill]] %s923_s25  ;;  %p730_p11 = pnand %p314_p8, %p111_p10 }
  0x1a   : > { %926 = sst [smem:[#allocation15_spill]] %s925_s26  ;;  %s630_s28 = smov [#allocation6]  }
  0x1b   : > { %s927_s27 = scalar_select %p730_p11, 1, 0 }
  0x1c   : > { %s124_s29 = sshll.u32 %s630_s28, 4  ;;  %p338_p12 = pneg %p730_p11  ;;  %s125_s29 = int_to_ptr.vmem [resolvable:$true] %s124_s29 }
  0x1d   : > { %s28_s3 = sadd.s32 1, %s620_s17  ;;  %s929_s1 = sld [smem:[#allocation17_spill]] }
  0x1e   : > { %p738_p13 = pnand %p338_p12, %p705_p1 }
  0x20   : > { %p446_p2 = pneg %p738_p13 }
  0x23   : > { %s444_s6 = scalar_lea.hbm %s929_s1, 128 }
  0x24   : > { %p445_p0 = scmp.ne.s32.totalorder %s929_s1, %s444_s6  ;;  %p451_p6 = scmp.lt.u32.totalorder %s444_s6, %s929_s1 }
  0x26   : > { %p447_p4 = pnand %p446_p2, %p445_p0 }
  0x28   : > { %p448_p5 = pneg %p447_p4 }
  0x2a   : > { %p453_p8 = pnand %p451_p6, %p448_p5 }
  0x2c   : > { %456 = shalt.err (!%p453_p8)
}
  0x2d   : > { %s457_s21 = scalar_lea.vmem %s125_s29, 128  ;;  %p465_p7 = scmp.lt.s32.totalorder %s125_s29, %s125_s29 }
  0x2e   : > { %p458_p10 = scmp.ne.s32.totalorder %s125_s29, %s457_s21  ;;  %p466_p1 = scmp.lt.s32.totalorder %s457_s21, %s457_s21 }
  0x30   : > { %p460_p12 = pnand %p458_p10, %p446_p2  ;;  %p467_p3 = por %p466_p1, %p465_p7 }
  0x32   : > { %p461_p9 = pneg %p460_p12 }
  0x34   : > { %p468_p11 = pnand %p467_p3, %p461_p9 }
  0x36   : > { %471 = shalt.err (!%p468_p11)
}
  0x37   : > { %341 = dma.hbm_to_vmem [thread:$0]  (!%p738_p13), %s929_s1, 128, %s125_s29, [#allocation7]  }
  0x38   : > { %p29_p0 = scmp.ge.s32.totalorder %s28_s3, 2  ;;  %s31_s5 = sadd.s32 1, %s624_s18 }
  0x39   : > { %s40_s6 = sadd.s32 1, %s608_s14  ;;  %p47_p1 = scmp.ne.s32.totalorder %s608_s14, %s604_s13 }
  0x3a   : > { %s955_s3 = smov (%p29_p0, %s28_s3), 0  ;;  %s957_s5 = smov (!%p29_p0, %s31_s5), %s624_s18 }
  0x3b   : > { %930 = sst [smem:[#allocation16_spill]] %s955_s3  ;;  %s36_s30 = ssub.s32 %s620_s17, %s955_s3 }
  0x3c   : > { %p48_p3 = scmp.eq.s32.totalorder %s628_s19, 0  ;;  %p33_p7 = scmp.ge.s32.totalorder %s957_s5, 2 }
  0x3d   : > { %p351_p9 = scmp.lt.s32.totalorder %s628_s19, 4  ;;  %s135_s29 = sand.u32 1, %s608_s14  }
  0x3e   : > { %p770_p11 = por %p48_p3, %p47_p1  ;;  %s959_s5 = smov (%p33_p7, %s957_s5), 0 }
  0x3f   : > { %s317_s8 = sshll.u32 %s135_s29, 3  ;;  %s35_s12 = ssub.s32 %s624_s18, %s959_s5 }
  0x40   : > { %s37_s20 = sor.u32 %s36_s30, %s35_s12  ;;  %p85_p13 = scmp.eq.s32.totalorder %s35_s12, 0 }
  0x41   : > { %p38_p2 = scmp.eq.s32.totalorder %s37_s20, 0  ;;  %s318_s21 = sshll.u32 %s624_s18, 1 }
  0x42   : > { %s783_s28 = scalar_select %p85_p13, %s596_s11, %s87_s23  }
  0x43   : > { %s786_s4 = scalar_select %p38_p2, %s608_s14, %s40_s6  }
  0x44   : > { %s144_s1 = sadd.s32 %s620_s17, %s318_s21  ;;  %s139_s3 = scalar_lea.vmem [#allocation3], %s317_s8 }
  0x45   : > { %s148_s26 = sshll.u32 %s139_s3, 4  ;;  %s319_s9 = sshll.u32 %s144_s1, 7  ;;  %s789_s26 = int_to_ptr.vmem [resolvable:$true] %s148_s26 }
  0x46   : > { %s794_s16 = scalar_lea.hbm %s903_s0, %s319_s9  ;;  %p800_p4 = pnand %p351_p9, %p770_p11 }
  0x47   : > { %s136_s1 = scalar_lea.sflag [#allocation4], %s135_s29  ;;  %s472_s3 = scalar_lea.hbm %s794_s16, 128 }
  0x48   : > { %p473_p5 = scmp.ne.s32.totalorder %s794_s16, %s472_s3  ;;  %p474_p6 = pneg %p800_p4 }
  0x49   : > { %s477_s25 = scalar_lea.hbm %s903_s0, 512  ;;  %p478_p12 = scmp.lt.u32.totalorder %s794_s16, %s903_s0 }
  0x4a   : > { %p475_p8 = pnand %p474_p6, %p473_p5  ;;  %p479_p0 = scmp.lt.u32.totalorder %s477_s25, %s472_s3 }
  0x4b   : > { %p481_p3 = scmp.lt.u32.totalorder %s472_s3, %s794_s16 }
  0x4c   : > { %p476_p10 = pneg %p475_p8  ;;  %p480_p1 = por %p479_p0, %p478_p12 }
  0x4e   : > { %p482_p7 = por %p481_p3, %p480_p1 }
  0x50   : > { %p483_p9 = pnand %p482_p7, %p476_p10 }
  0x52   : > { %486 = shalt.err (!%p483_p9)
}
  0x53   : > { %s487_s7 = scalar_lea.vmem %s789_s26, 128  ;;  %s631_s29 = smov [#allocation3]  }
  0x54   : > { %p488_p11 = scmp.ne.s32.totalorder %s789_s26, %s487_s7  ;;  %s492_s8 = sshll.u32 %s631_s29, 4  ;;  %s493_s8 = int_to_ptr.vmem [resolvable:$false] %s492_s8 }
  0x55   : > { %s494_s12 = scalar_lea.vmem %s493_s8, 256  ;;  %p495_p5 = scmp.lt.s32.totalorder %s789_s26, %s493_s8 }
  0x56   : > { %p490_p13 = pnand %p488_p11, %p474_p6  ;;  %p496_p8 = scmp.lt.s32.totalorder %s494_s12, %s487_s7 }
  0x58   : > { %p491_p2 = pneg %p490_p13  ;;  %p497_p12 = por %p496_p8, %p495_p5 }
  0x5a   : > { %p498_p0 = pnand %p497_p12, %p491_p2 }
  0x5c   : > { %501 = shalt.err (!%p498_p0)
}
  0x5d   : > { %345 = dma.hbm_to_vmem [thread:$0]  (!%p800_p4), %s794_s16, 128, %s789_s26, %s136_s1  }
  0x5e   : > { %p933_p10 = scmp.ne.s32.totalorder %s927_s27, 0 }
  0x5f   : > { %s159_s20 = sand.u32 (!%p933_p10), 1, %s604_s13   ;;  %p934_p6 = scmp.ne.s32.totalorder (!%p933_p10), %s922_s24, 0 }
  0x60   : > { %157 = sbr.rel (%p933_p10) target bundleno = 157 (0x9d), region = 28  ;;  %s321_s21 = sshll.u32 (!%p933_p10), %s159_s20, 3 }
  0x61   : > { %s160_s3 = scalar_lea.sflag (!%p933_p10), [#allocation4], %s159_s20  ;;  %s163_s2 = scalar_lea.vmem (!%p933_p10), [#allocation3], %s321_s21 }
  0x67   : > { %575 = dma.done.wait (%p934_p6), %s160_s3, 128  }
  0x68   : > { %577 = vsyncadd (%p934_p6), %s160_s3, 4294967168  ;;  %p935_p1 = scmp.ne.s32.totalorder %s921_s22, 0 }
  0x6a   : > { %579 = dma.done.wait (%p935_p1), [#allocation7], 128  }
  0x6b   : > { %581 = vsyncadd (%p935_p1), [#allocation7], 4294967168  ;;  %s185_s16 = sand.u32 1, %s592_s10   ;;  %p324_p4 = scmp.ne.s32.totalorder %s612_s15, 0 }
  0x6c   : > { %s323_s26 = sshll.u32 %s185_s16, 3  ;;  %v632_v0 = vmov (!%p324_p4), 0.0  }
  0x6d   : > { %s187_s27 = scalar_lea.vmem [#allocation8], %s323_s26  ;;  %191 = sbr.rel (%p324_p4) target bundleno = 116 (0x74), region = 40  ;;  %192 = vst [vmem:[#allocation2] sm:$0xff] (!%p324_p4), %v632_v0 }
  0x74 PF: > { %v193_v1 = vld [vmem:[#allocation2] sm:$0xff]  ;;  %v194_v2 = vld [vmem:[%s163_s2] sm:$0xff]  ;;  %p325_p3 = scmp.ne.s32.totalorder %s612_s15, 1 }
  0x75   : > { %v195_v3 = vadd.f32 %v194_v2, %v193_v1  ;;  %v202_v5 = vld [vmem:[#allocation6] sm:$0xff] (!%p325_p3) }
  0x76   : > { %200 = sbr.rel (%p325_p3) target bundleno = 130 (0x82), region = 44 }
  0x77   : > { %196 = vst [vmem:[#allocation2] sm:$0xff] %v195_v3 }
  0x7e   : > { %v201_v4 = vld [vmem:[#allocation2] sm:$0xff] }
  0x7f   : > { %v203_v6 = vadd.f32 %v202_v5, %v201_v4 }
  0x81   : > { %204 = vst [vmem:[%s187_s27] sm:$0xff] %v203_v6 }
  0x82 PF: > { %s936_s22 = sld [smem:[#allocation13_spill]]  ;;  %s937_s24 = sld [smem:[#allocation14_spill]] }
  0x83   : > { %s938_s25 = sld [smem:[#allocation18_spill]]  ;;  %s219_s30 = sshll.u32 %s187_s27, 4  ;;  %s220_s30 = int_to_ptr.vmem [resolvable:$true] %s219_s30 }
  0x84   : > { %s206_s7 = scalar_lea.sflag [#allocation5], %s185_s16  ;;  %s502_s29 = scalar_lea.vmem %s220_s30, 128 }
  0x85   : > { %p503_p7 = scmp.ne.s32.totalorder %s220_s30, %s502_s29  ;;  %s633_s15 = smov [#allocation8]  }
  0x86   : > { %s506_s8 = sshll.u32 %s633_s15, 4  ;;  %s507_s8 = int_to_ptr.vmem [resolvable:$false] %s506_s8 }
  0x87   : > { %s508_s12 = scalar_lea.vmem %s507_s8, 256  ;;  %p509_p2 = scmp.lt.s32.totalorder %s220_s30, %s507_s8 }
  0x88   : > { %s327_s23 = sshll.u32 %s936_s22, 7  ;;  %p939_p9 = scmp.ne.s32.totalorder %s937_s24, 0 }
  0x89   : > { %s847_s6 = scalar_lea.hbm %s938_s25, %s327_s23  ;;  %p510_p5 = scmp.lt.s32.totalorder %s508_s12, %s502_s29 }
  0x8a   : > { %p504_p11 = pnand %p503_p7, %p939_p9 }
  0x8b   : > { %p511_p8 = por %p510_p5, %p509_p2 }
  0x8c   : > { %p505_p13 = pneg %p504_p11 }
  0x8e   : > { %p512_p12 = pnand %p511_p8, %p505_p13 }
  0x90   : > { %515 = shalt.err (!%p512_p12)
}
  0x91   : > { %s516_s20 = scalar_lea.hbm %s847_s6, 128  ;;  %s520_s2 = scalar_lea.hbm %s938_s25, 256 }
  0x92   : > { %p517_p0 = scmp.ne.s32.totalorder %s847_s6, %s516_s20  ;;  %p521_p1 = scmp.lt.u32.totalorder %s847_s6, %s938_s25 }
  0x93   : > { %p522_p4 = scmp.lt.u32.totalorder %s520_s2, %s516_s20  ;;  %p524_p7 = scmp.lt.u32.totalorder %s516_s20, %s847_s6 }
  0x94   : > { %p518_p10 = pnand %p517_p0, %p939_p9 }
  0x95   : > { %p523_p3 = por %p522_p4, %p521_p1 }
  0x96   : > { %p519_p6 = pneg %p518_p10 }
  0x97   : > { %p525_p11 = por %p524_p7, %p523_p3 }
  0x99   : > { %p526_p13 = pnand %p525_p11, %p519_p6 }
  0x9b   : > { %529 = shalt.err (!%p526_p13)
}
  0x9c   : > { %336 = dma.vmem_to_hbm [thread:$0]  (%p939_p9), %s220_s30, 128, %s847_s6, %s206_s7  }
  0x9d PF: > { %s940_s27 = sld [smem:[#allocation12_spill]]  ;;  %s941_s22 = sld [smem:[#allocation15_spill]] }
  0x9e   : > { %p353_p2 = scmp.ge.s32.totalorder %s628_s19, 2 }
  0xa3   : > { %s231_s23 = sand.u32 1, %s940_s27   ;;  %p942_p5 = scmp.ne.s32.totalorder %s941_s22, 0 }
  0xa4   : > { %s232_s1 = scalar_lea.sflag [#allocation5], %s231_s23 }
  0xa5   : > { %p347_p8 = pnand %p353_p2, %p942_p5 }
  0xa7   : > { %583 = dma.done.wait (!%p347_p8), %s232_s1, 128  }
  0xa8   : > { %585 = vsyncadd (!%p347_p8), %s232_s1, 4294967168  ;;  %s19_s19 = sadd.s32 1, %s628_s19   ;;  %s943_s24 = sld [smem:[#allocation16_spill]] }
  0xa9   : > { %p16_p12 = scmp.ge.s32.totalorder %s19_s19, 6   ;;  %s944_s9 = smov %s592_s10 }
  0xaa   : > { %s945_s10 = smov %s596_s11  ;;  %s946_s11 = smov %s783_s28 }
  0xab   : > { %s947_s12 = smov %s604_s13  ;;  %s948_s13 = smov %s608_s14 }
  0xac   : > { %s949_s14 = smov %s786_s4  ;;  %s950_s15 = smov %s620_s17 }
  0xad   : > { %s951_s16 = smov %s624_s18  ;;  %s953_s18 = smov %s959_s5 }
  0xae   : > { %s952_s17 = smov %s943_s24  ;;  %18 = sbr.rel (!%p16_p12) target bundleno = 13 (0xd), region = 85 }
  0xb5   :  { %237 = vsyncpa [#allocation4], 1 }
  0xb6   :  { %239 = vsyncpa [#allocation4 + $0x1], 1 }
  0xb7   :  { %240 = vsyncpa [#allocation7], 1 }
  0xb8   :  { %241 = vsyncpa [#allocation5], 1 }
  0xb9   :  { %243 = vsyncpa [#allocation5 + $0x1], 1 }

// kernel: tpu_custom_call.1
= control target key start
LH: loop header
LB: loop body
LE: loop exit
PB: predicated region body
PF: predicated region fallthrough
CT: control target
= control target key end

     0   :  { %s1900_s0 = inlined_call_operand.vmem [shape: bf16[256,256], index: 0, kind: input, shape index: {}]   ;;  %s1901_s1 = inlined_call_operand.vmem [shape: f32[256,1], index: 1, kind: input, shape index: {}]   ;;  %s1902_s2 = inlined_call_operand.hbm [shape: bf16[256,128], index: 2, kind: input, shape index: {}]   ;;  %s1903_s3 = inlined_call_operand.hbm [shape: bf16[256,128], index: 3, kind: input, shape index: {}]   ;;  %s1904_s4 = inlined_call_operand.hbm [shape: bf16[256,128], index: 4, kind: input, shape index: {}]   ;;  %s1905_s5 = inlined_call_operand.vmem [shape: f32[1,128], index: 5, kind: input, shape index: {}]   ;;  %s1906_s6 = inlined_call_operand.hbm [shape: bf16[256,128], index: 6, kind: output, shape index: {}]  }
   0x1   :  { %1925 = sst [smem:[#allocation27_spill]] %s1901_s1 }
   0x2   :  { %1926 = sst [smem:[#allocation28_spill]] %s1905_s5 }
   0x3   :  { %1927 = sst [smem:[#allocation29_spill]] %s1906_s6 }
   0x4   :  { %11 = vsyncpa [#allocation5], 0 }
   0x5   :  { %13 = vsyncpa [#allocation5 + $0x1], 0 }
   0x6   :  { %14 = vsyncpa [#allocation8], 0 }
   0x7   :  { %16 = vsyncpa [#allocation8 + $0x1], 0 }
   0x8   :  { %17 = vsyncpa [#allocation6], 0 }
   0x9   :  { %19 = vsyncpa [#allocation6 + $0x1], 0  ;;  %s1502_s21 = smov 0   ;;  %s1504_s22 = smov 0  }
   0xa   :  { %s1506_s23 = smov 0   ;;  %s1508_s24 = smov 0  }
   0xb   :  { %s1510_s25 = smov 0   ;;  %s1512_s26 = smov 0  }
   0xc   :  { %s1514_s27 = smov 0   ;;  %s1516_s28 = smov 0  }
   0xd   :  { %s1518_s29 = smov 0   ;;  %s1520_s30 = smov 0  }
   0xe   :  { %s1522_s7 = smov 0   ;;  %s1524_s8 = smov 0  }
   0xf   :  { %s1526_s9 = smov 0  }
  0x10 LB: > { %1928 = sst [smem:[#allocation15_spill]] %s1403_s21  ;;  %s1568_s10 = sadd.s32 4294967295, %s1451_s9   ;;  %s1451_s9 = sphi %s1526_s9, %s25_s9   ;;  %s1447_s8 = sphi %s1524_s8, %s1992_s8   ;;  %s1443_s7 = sphi %s1522_s7, %s1991_s7   ;;  %s1439_s30 = sphi %s1520_s30, %s1990_s30   ;;  %s1435_s29 = sphi %s1518_s29, %s1989_s29   ;;  %s1431_s28 = sphi %s1516_s28, %s1988_s28   ;;  %s1427_s27 = sphi %s1514_s27, %s1987_s27   ;;  %s1423_s26 = sphi %s1512_s26, %s1986_s26   ;;  %s1419_s25 = sphi %s1510_s25, %s1985_s25   ;;  %s1415_s24 = sphi %s1508_s24, %s1984_s24   ;;  %s1411_s23 = sphi %s1506_s23, %s1983_s23   ;;  %s1407_s22 = sphi %s1504_s22, %s1982_s22   ;;  %s1403_s21 = sphi %s1502_s21, %s1975_s21  }
  0x11   : > { %1929 = sst [smem:[#allocation16_spill]] %s1407_s22  ;;  %s34_s12 = sadd.s32 1, %s1443_s7 }
  0x12   : > { %1930 = sst [smem:[#allocation17_spill]] %s1435_s29  ;;  %s37_s13 = sadd.s32 1, %s1447_s8 }
  0x13   : > { %1931 = sst [smem:[#allocation18_spill]] %s1439_s30  ;;  %p35_p0 = scmp.ge.s32.totalorder %s34_s12, 2 }
  0x14   : > { %s46_s14 = sadd.s32 1, %s1431_s28  ;;  %p53_p1 = scmp.ne.s32.totalorder %s1431_s28, %s1427_s27 }
  0x15   : > { %p54_p2 = scmp.eq.s32.totalorder %s1451_s9, 0  ;;  %s1994_s12 = smov (%p35_p0, %s34_s12), 0 }
  0x16   : > { %1932 = sst [smem:[#allocation19_spill]] %s1994_s12  ;;  %s1996_s13 = smov (!%p35_p0, %s37_s13), %s1447_s8 }
  0x17   : > { %s42_s15 = ssub.s32 %s1443_s7, %s1994_s12  ;;  %p1584_p3 = por %p54_p2, %p53_p1 }
  0x18   : > { %p39_p4 = scmp.ge.s32.totalorder %s1996_s13, 16  ;;  %p96_p5 = scmp.eq.s32.totalorder %s42_s15, 0 }
  0x19   : > { %s1933_s16 = scalar_select %p1584_p3, 1, 0 }
  0x1a   : > { %s98_s17 = sadd.s32 1, %s1423_s26  ;;  %p105_p6 = scmp.ne.s32.totalorder %s1423_s26, %s1419_s25 }
  0x1b   : > { %s1998_s13 = smov (%p39_p4, %s1996_s13), 0  ;;  %p111_p8 = scmp.ne.s32.totalorder %s1419_s25, %s1415_s24 }
  0x1c   : > { %1934 = sst [smem:[#allocation20_spill]] %s1998_s13  ;;  %s41_s19 = ssub.s32 %s1447_s8, %s1998_s13 }
  0x1d   : > { %s1594_s18 = scalar_select %p96_p5, %s1423_s26, %s98_s17  }
  0x1e   : > { %p1600_p7 = por %p105_p6, %p54_p2  ;;  %s43_s11 = sor.u32 %s42_s15, %s41_s19 }
  0x1f   : > { %1935 = sst [smem:[#allocation21_spill]] %s1594_s18  ;;  %p44_p9 = scmp.eq.s32.totalorder %s43_s11, 0 }
  0x20   : > { %s1936_s20 = scalar_select %p1600_p7, 1, 0 }
  0x21   : > { %p1911_p10 = scmp.eq.s32.totalorder %s1568_s10, 0  ;;  %p122_p11 = scmp.eq.s32.totalorder %s41_s19, 0 }
  0x22   : > { %s124_s12 = sadd.s32 1, %s1411_s23  ;;  %p131_p13 = scmp.ne.s32.totalorder %s1411_s23, %s1407_s22 }
  0x23   : > { %s1609_s6 = scalar_select %p44_p9, %s1431_s28, %s46_s14  }
  0x24   : > { %p1613_p12 = por %p1911_p10, %p111_p8  ;;  %p1624_p0 = por %p131_p13, %p54_p2 }
  0x25   : > { %1937 = sst [smem:[#allocation22_spill]] %s1609_s6  ;;  %p137_p1 = scmp.ne.s32.totalorder %s1407_s22, %s1403_s21 }
  0x26   : > { %s1938_s17 = scalar_select %p1613_p12, 1, 0 }
  0x27   : > { %s1620_s13 = scalar_select %p122_p11, %s1411_s23, %s124_s12  }
  0x28   : > { %s1940_s15 = scalar_select %p1624_p0, 1, 0 }
  0x29   : > { %1939 = sst [smem:[#allocation23_spill]] %s1620_s13  ;;  %p203_p4 = scmp.eq.s32.totalorder %s1568_s10, 31 }
  0x2a   : > { %s1941_s24 = sadd.s32 4294967294, %s1451_s9   ;;  %p1635_p6 = por %p137_p1, %p1911_p10 }
  0x2b   : > { %p209_p5 = scmp.eq.s32.totalorder %s1941_s24, 31  ;;  %p939_p8 = scmp.ge.s32.totalorder %s1451_s9, 1 }
  0x2c   : > { %s1942_s11 = scalar_select %p1635_p6, 1, 0 }
  0x2d   : > { %p1640_p9 = por %p203_p4, %p131_p13  ;;  %p1644_p11 = por %p209_p5, %p137_p1 }
  0x2e   : > { %1943 = sst [smem:[#allocation24_spill]] %s1942_s11  ;;  %p216_p2 = scmp.lt.s32.totalorder %s1451_s9, 33 }
  0x2f   : > { %s1944_s14 = scalar_select %p1640_p9, 1, 0 }
  0x30   : > { %s1946_s12 = scalar_select %p1644_p11, 1, 0 }
  0x31   : > { %1945 = sst [smem:[#allocation25_spill]] %s1944_s14  ;;  %p1649_p12 = pnand %p939_p8, %p216_p2 }
  0x32   : > { %1947 = sst [smem:[#allocation26_spill]] %s1946_s12  ;;  %s1453_s24 = smov [#allocation9]  }
  0x33   : > { %s1948_s19 = scalar_select %p1649_p12, 1, 0 }
  0x34   : > { %s228_s6 = sshll.u32 %s1453_s24, 4  ;;  %p1068_p10 = pneg %p1649_p12  ;;  %s229_s6 = int_to_ptr.vmem [resolvable:$true] %s228_s6 }
  0x35   : > { %p1949_p6 = scmp.eq.s32.totalorder %s1568_s10, 0  ;;  %s1221_s12 = scalar_lea.hbm %s1904_s4, 2048 }
  0x36   : > { %p1222_p1 = scmp.ne.s32.totalorder %s1904_s4, %s1221_s12 }
  0x37   : > { %p1657_p13 = pnand %p1068_p10, %p1949_p6  ;;  %p1228_p10 = scmp.lt.u32.totalorder %s1221_s12, %s1904_s4 }
  0x39   : > { %p1223_p4 = pneg %p1657_p13 }
  0x3b   : > { %p1224_p5 = pnand %p1223_p4, %p1222_p1 }
  0x3d   : > { %p1225_p8 = pneg %p1224_p5 }
  0x3f   : > { %p1230_p6 = pnand %p1228_p10, %p1225_p8 }
  0x41   : > { %1233 = shalt.err (!%p1230_p6)
}
  0x42   : > { %s1234_s1 = scalar_lea.vmem %s229_s6, 2048  ;;  %p1242_p12 = scmp.lt.s32.totalorder %s229_s6, %s229_s6 }
  0x43   : > { %p1235_p2 = scmp.ne.s32.totalorder %s229_s6, %s1234_s1  ;;  %p1243_p0 = scmp.lt.s32.totalorder %s1234_s1, %s1234_s1 }
  0x45   : > { %p1237_p11 = pnand %p1235_p2, %p1223_p4  ;;  %p1244_p7 = por %p1243_p0, %p1242_p12 }
  0x47   : > { %p1238_p9 = pneg %p1237_p11 }
  0x49   : > { %p1245_p3 = pnand %p1244_p7, %p1238_p9 }
  0x4b   : > { %1248 = shalt.err (!%p1245_p3)
}
  0x4c   : > { %s1454_s5 = smov 64   ;;  %s1455_s21 = smov 4  }
  0x4d   : > { %1071 = dma.hbm_to_vmem [thread:$0]  (!%p1657_p13), %s1904_s4, 2048, %s229_s6, [#allocation8], %s1454_s5, %s1454_s5, %s1455_s21  }
  0x4e   : > { %p941_p1 = scmp.ge.s32.totalorder %s1451_s9, 32 }
  0x4f   : > { %p1951_p5 = scmp.ne.s32.totalorder (!%p941_p1), %s1933_s16, 0 }
  0x50   : > { %241 = sbr.rel (%p941_p1) target bundleno = 147 (0x93), region = 24 }
  0x57   : > { %244 = sbr.rel (!%p1951_p5) target bundleno = 94 (0x5e), region = 28  ;;  %s246_s1 = sand.u32 (%p1951_p5), 1, %s1431_s28  }
  0x58   : > { %s996_s29 = sshll.u32 (%p1951_p5), %s1447_s8, 2  ;;  %s942_s12 = sshll.u32 (%p1951_p5), %s246_s1, 3 }
  0x59   : > { %s251_s24 = sadd.s32 (%p1951_p5), %s1443_s7, %s996_s29  ;;  %s248_s6 = scalar_lea.vmem (%p1951_p5), [#allocation3], %s942_s12 }
  0x5a   : > { %s945_s30 = sshll.u32 (%p1951_p5), %s251_s24, 2 }
  0x5b   : > { %s253_s22 = scalar_lea.vmem (%p1951_p5), %s1900_s0, %s945_s30 }
  0x5c   : > { %v269_v0 = vld [vmem:[%s253_s22] sm:$0xf] (%p1951_p5)  ;;  %v271_v1 = vld [vmem:[%s253_s22 + $0x8] sm:$0xf] (%p1951_p5) }
  0x5d   : > { %270 = vst [vmem:[%s248_s6] sm:$0xf] (%p1951_p5), %v269_v0  ;;  %272 = vst [vmem:[%s248_s6 + $0x4] sm:$0xf] (%p1951_p5), %v271_v1 }
  0x5e PF: > { %s309_s16 = sand.u32 1, %s1423_s26   ;;  %s997_s5 = sshll.u32 %s1443_s7, 10 }
  0x5f   : > { %s946_s21 = sshll.u32 %s309_s16, 6  ;;  %s1691_s1 = scalar_lea.hbm %s1902_s2, %s997_s5 }
  0x60   : > { %s313_s22 = scalar_lea.vmem [#allocation4], %s946_s21  ;;  %s1695_s11 = scalar_lea.sflag [#allocation5], %s309_s16 }
  0x61   : > { %s320_s30 = sshll.u32 %s313_s22, 4  ;;  %s1249_s29 = scalar_lea.hbm %s1691_s1, 1024  ;;  %s1693_s30 = int_to_ptr.vmem [resolvable:$true] %s320_s30 }
  0x62   : > { %p1250_p3 = scmp.ne.s32.totalorder %s1691_s1, %s1249_s29  ;;  %p1952_p7 = scmp.ne.s32.totalorder %s1936_s20, 0 }
  0x63   : > { %s1253_s18 = scalar_lea.hbm %s1902_s2, 2048  ;;  %p1254_p9 = scmp.lt.u32.totalorder %s1691_s1, %s1902_s2 }
  0x64   : > { %p1251_p12 = pnand %p1250_p3, %p1952_p7  ;;  %p1255_p11 = scmp.lt.u32.totalorder %s1253_s18, %s1249_s29 }
  0x65   : > { %p1257_p4 = scmp.lt.u32.totalorder %s1249_s29, %s1691_s1 }
  0x66   : > { %p1252_p0 = pneg %p1251_p12  ;;  %p1256_p13 = por %p1255_p11, %p1254_p9 }
  0x68   : > { %p1258_p8 = por %p1257_p4, %p1256_p13 }
  0x6a   : > { %p1259_p10 = pnand %p1258_p8, %p1252_p0 }
  0x6c   : > { %1262 = shalt.err (!%p1259_p10)
}
  0x6d   : > { %s1263_s16 = scalar_lea.vmem %s1693_s30, 1024  ;;  %s1456_s21 = smov [#allocation4]  }
  0x6e   : > { %p1264_p6 = scmp.ne.s32.totalorder %s1693_s30, %s1263_s16  ;;  %s1267_s13 = sshll.u32 %s1456_s21, 4  ;;  %s1268_s13 = int_to_ptr.vmem [resolvable:$false] %s1267_s13 }
  0x6f   : > { %s1269_s14 = scalar_lea.vmem %s1268_s13, 2048  ;;  %p1270_p5 = scmp.lt.s32.totalorder %s1693_s30, %s1268_s13 }
  0x70   : > { %p1265_p2 = pnand %p1264_p6, %p1952_p7  ;;  %p1271_p3 = scmp.lt.s32.totalorder %s1269_s14, %s1263_s16 }
  0x72   : > { %p1266_p1 = pneg %p1265_p2  ;;  %p1272_p12 = por %p1271_p3, %p1270_p5 }
  0x74   : > { %p1273_p9 = pnand %p1272_p12, %p1266_p1 }
  0x76   : > { %1276 = shalt.err (!%p1273_p9)
}
  0x77   : > { %s1457_s22 = smov 64   ;;  %s1458_s29 = smov 4  }
  0x78   : > { %1060 = dma.hbm_to_vmem [thread:$0]  (%p1952_p7), %s1691_s1, 1024, %s1693_s30, %s1695_s11, %s1457_s22, %s1457_s22, %s1458_s29  }
  0x79   : > { %s330_s12 = sand.u32 1, %s1451_s9   ;;  %s332_s24 = sand.u32 1, %s1411_s23  }
  0x7a   : > { %s949_s18 = sshll.u32 %s332_s24, 3  ;;  %s998_s6 = sshll.u32 %s1447_s8, 7 }
  0x7b   : > { %s1728_s21 = scalar_lea.hbm %s1903_s3, %s998_s6  ;;  %s334_s13 = scalar_lea.vmem [#allocation7], %s949_s18 }
  0x7c   : > { %s341_s14 = sshll.u32 %s334_s13, 4  ;;  %s1732_s20 = scalar_lea.sflag [#allocation8], %s330_s12  ;;  %s1730_s14 = int_to_ptr.vmem [resolvable:$true] %s341_s14 }
  0x7d   : > { %s1277_s1 = scalar_lea.hbm %s1728_s21, 128  ;;  %p1953_p0 = scmp.ne.s32.totalorder %s1940_s15, 0 }
  0x7e   : > { %p1278_p7 = scmp.ne.s32.totalorder %s1728_s21, %s1277_s1  ;;  %s1281_s24 = scalar_lea.hbm %s1903_s3, 2048 }
  0x7f   : > { %p1282_p4 = scmp.lt.u32.totalorder %s1728_s21, %s1903_s3  ;;  %p1283_p8 = scmp.lt.u32.totalorder %s1281_s24, %s1277_s1 }
  0x80   : > { %p1279_p11 = pnand %p1278_p7, %p1953_p0  ;;  %p1285_p6 = scmp.lt.u32.totalorder %s1277_s1, %s1728_s21 }
  0x81   : > { %p1284_p10 = por %p1283_p8, %p1282_p4 }
  0x82   : > { %p1280_p13 = pneg %p1279_p11 }
  0x83   : > { %p1286_p2 = por %p1285_p6, %p1284_p10 }
  0x85   : > { %p1287_p1 = pnand %p1286_p2, %p1280_p13 }
  0x87   : > { %1290 = shalt.err (!%p1287_p1)
}
  0x88   : > { %s1291_s12 = scalar_lea.vmem %s1730_s14, 128  ;;  %s1459_s18 = smov [#allocation7]  }
  0x89   : > { %p1292_p5 = scmp.ne.s32.totalorder %s1730_s14, %s1291_s12  ;;  %s1295_s16 = sshll.u32 %s1459_s18, 4  ;;  %s1296_s16 = int_to_ptr.vmem [resolvable:$false] %s1295_s16 }
  0x8a   : > { %s1297_s13 = scalar_lea.vmem %s1296_s16, 256  ;;  %p1298_p9 = scmp.lt.s32.totalorder %s1730_s14, %s1296_s16 }
  0x8b   : > { %p1293_p3 = pnand %p1292_p5, %p1953_p0  ;;  %p1299_p7 = scmp.lt.s32.totalorder %s1297_s13, %s1291_s12 }
  0x8d   : > { %p1294_p12 = pneg %p1293_p3  ;;  %p1300_p11 = por %p1299_p7, %p1298_p9 }
  0x8f   : > { %p1301_p4 = pnand %p1300_p11, %p1294_p12 }
  0x91   : > { %1304 = shalt.err (!%p1301_p4)
}
  0x92   : > { %1061 = dma.hbm_to_vmem [thread:$0]  (%p1953_p0), %s1728_s21, 128, %s1730_s14, %s1732_s20, %s1457_s22, %s1457_s22, %s1458_s29  }
  0x93 PF: > { %p1954_p13 = scmp.ne.s32.totalorder %s1948_s19, 0 }
  0x94   : > { %s356_s1 = sand.u32 (!%p1954_p13), 1, %s1427_s27   ;;  %s362_s30 = sand.u32 (!%p1954_p13), 1, %s1419_s25  }
  0x95   : > { %353 = sbr.rel (%p1954_p13) target bundleno = 699 (0x2bb), region = 81  ;;  %s1763_s11 = sshll.u32 (!%p1954_p13), %s356_s1, 3 }
  0x96   : > { %s954_s15 = sshll.u32 (!%p1954_p13), %s362_s30, 6  ;;  %s358_s24 = scalar_lea.vmem (!%p1954_p13), [#allocation3], %s1763_s11 }
  0x97   : > { %s363_s6 = scalar_lea.sflag (!%p1954_p13), [#allocation5], %s362_s30  ;;  %s1766_s5 = scalar_lea.vmem (!%p1954_p13), [#allocation4], %s954_s15 }
  0x98   : > { %p1955_p8 = scmp.ne.s32.totalorder (!%p1954_p13), %s1938_s17, 0 }
  0x9c   : > { %1386 = dma.done.wait (%p1955_p8), %s363_s6, 1024  }
  0x9d   : > { %1388 = vsyncadd (%p1955_p8), %s363_s6, 4294966272  ;;  %s1956_s19 = sld [smem:[#allocation16_spill]]  ;;  %s1957_s22 = sld [smem:[#allocation24_spill]] }
  0x9e   : > { %s371_s29 = sand.u32 1, %s1568_s10  }
  0x9f   : > { %s372_s14 = scalar_lea.sflag [#allocation8], %s371_s29 }
  0xa3   : > { %s373_s27 = sand.u32 1, %s1956_s19   ;;  %p1958_p0 = scmp.ne.s32.totalorder %s1957_s22, 0 }
  0xa4   : > { %s1776_s21 = sshll.u32 %s373_s27, 3 }
  0xa5   : > { %s375_s20 = scalar_lea.vmem [#allocation7], %s1776_s21 }
  0xa6   : > { %1390 = dma.done.wait (%p1958_p0), %s372_s14, 128  }
  0xa7   : > { %1392 = vsyncadd (%p1958_p0), %s372_s14, 4294967168  ;;  %p1959_p10 = scmp.eq.s32.totalorder %s1568_s10, 0 }
  0xa9   : > { %1394 = dma.done.wait (%p1959_p10), [#allocation8], 2048   ;;  %p1960_p6 = pmov %p1959_p10 }
  0xaa   : > { %s1961_s17 = sld [smem:[#allocation18_spill]]  ;;  %s1962_s1 = sld [smem:[#allocation27_spill]] }
  0xab   : > { %1396 = vsyncadd (%p1960_p6), [#allocation8], 4294965248  ;;  %s421_s15 = scalar_lea.vmem [#allocation10], %s1776_s21  ;;  %s1963_s6 = sld [smem:[#allocation17_spill]] }
  0xb0   : > { %s958_s12 = sshll.u32 %s1961_s17, 1 }
  0xb1   : > { %p424_p2 = scmp.lt.s32.totalorder %s958_s12, 31  ;;  %p960_p1 = scmp.ne.s32.totalorder %s1963_s6, 0 }
  0xb2   : > { %v1460_v2 = vmov (!%p960_p1), 0.0  }
  0xb3   : > { %s2000_s12 = smov (!%p424_p2, %s958_s12), 31  ;;  %436 = sbr.rel (%p960_p1) target bundleno = 186 (0xba), region = 101 }
  0xb4   : > { %s959_s18 = sshll.u32 %s2000_s12, 3  ;;  %437 = vst [vmem:[#allocation2] sm:$0xff] (!%p960_p1), %v1460_v2  ;;  %438 = vst [vmem:[#allocation2 + $0x8] sm:$0xff] (!%p960_p1), %v1460_v2 }
  0xb5   : > { %s1791_s30 = scalar_lea.vmem %s1962_s1, %s959_s18 }
  0xba PF: > { %v1194_v3 = vld [vmem:[%s1766_s5] sm:$0xff]   ;;  %v1461_v4 = vmov 0.0   ;;  %v1195_v5 = vld [vmem:[%s1766_s5 + $0x8] sm:$0xff]   ;;  %vm1462_vm0 = vmmov 0   ;;  %v1196_v6 = vld [vmem:[%s1766_s5 + $0x10] sm:$0xff]   ;;  %s1964_s10 = sld [smem:[#allocation17_spill]] }
  0xbb   : > { %1038 = vmatprep.subr.bf16.mxu0 %v1461_v4  ;;  %1054 = vmatprep.mubr.msk.bf16.mxu0 %vm1462_vm0, %v1461_v4  ;;  %v1197_v7 = vld [vmem:[%s1766_s5 + $0x18] sm:$0xff]   ;;  %v1198_v8 = vld [vmem:[%s1766_s5 + $0x20] sm:$0xff]   ;;  %v1199_v9 = vld [vmem:[%s1766_s5 + $0x28] sm:$0xff]  }
  0xbc   : > { %1039 = vmatpush3.bf16.msra.mxu0 %v1194_v3  ;;  %v1200_v10 = vld [vmem:[%s1766_s5 + $0x30] sm:$0xff]   ;;  %v1201_v11 = vld [vmem:[%s1766_s5 + $0x38] sm:$0xff]   ;;  %v439_v13 = vld [vmem:[#allocation2] sm:$0xff] }
  0xbd   : > { %1040 = vmatprep.subr.bf16.mxu0 %v1461_v4  ;;  %v1202_v12 = vld [vmem:[%s358_s24] sm:$0xff]   ;;  %v440_v15 = vld [vmem:[#allocation2 + $0x8] sm:$0xff] }
  0xc0   : > { %1041 = vmatpush3.bf16.msra.mxu0 %v1195_v5  ;;  %p970_p5 = scmp.ne.s32.totalorder %s1964_s10, 1 }
  0xc1   : > { %1042 = vmatprep.subr.bf16.mxu0 %v1461_v4  ;;  %v564_v21 = vld [vmem:[%s1791_s30] sm:$0xff] (!%p970_p5)  ;;  %v1463_v22 = vmov (!%p970_p5), 0   ;;  %v565_v23 = vld [vmem:[%s1791_s30 + $0x8] sm:$0xff] (!%p970_p5)  ;;  %v1204_v24 = vld [vmem:[#allocation9 + $0x40] sm:$0xff] (!%p970_p5)   ;;  %s1965_s5 = sld [smem:[#allocation28_spill]] (!%p970_p5) }
  0xc2   : > { %1203 = vset.pattern.permute.xlu0 (!%p970_p5), %v1463_v22  ;;  %v1205_v25 = vld [vmem:[#allocation9] sm:$0xff] (!%p970_p5)   ;;  %v1206_v26 = vld [vmem:[#allocation9 + $0x48] sm:$0xff] (!%p970_p5)   ;;  %v1208_v28 = vld [vmem:[#allocation9 + $0x50] sm:$0xff] (!%p970_p5)  }
  0xc3   : > { %568 = vperm.xlu0 (!%p970_p5), %1203, %v564_v21   ;;  %v1207_v27 = vld [vmem:[#allocation9 + $0x8] sm:$0xff] (!%p970_p5)   ;;  %v1209_v29 = vld [vmem:[#allocation9 + $0x10] sm:$0xff] (!%p970_p5)   ;;  %v1210_v30 = vld [vmem:[#allocation9 + $0x58] sm:$0xff] (!%p970_p5)  }
  0xc4   : > { %1043 = vmatpush3.bf16.msra.mxu0 %v1196_v6  ;;  %v1211_v31 = vld [vmem:[#allocation9 + $0x18] sm:$0xff] (!%p970_p5)   ;;  %v1212_v32 = vld [vmem:[#allocation9 + $0x60] sm:$0xff] (!%p970_p5)   ;;  %v1214_v34 = vld [vmem:[#allocation9 + $0x68] sm:$0xff] (!%p970_p5)  }
  0xc5   : > { %1044 = vmatprep.subr.bf16.mxu0 %v1461_v4  ;;  %v1213_v33 = vld [vmem:[#allocation9 + $0x20] sm:$0xff] (!%p970_p5)   ;;  %v1220_v35 = vld [vmem:[%s375_s20] sm:$0xff] (!%p970_p5)   ;;  %v1215_v36 = vld [vmem:[#allocation9 + $0x28] sm:$0xff] (!%p970_p5)  }
  0xc6   : > { %v1216_v37 = vld [vmem:[#allocation9 + $0x70] sm:$0xff] (!%p970_p5)   ;;  %v1218_v39 = vld [vmem:[#allocation9 + $0x78] sm:$0xff] (!%p970_p5)  }
  0xc7   : > { %573 = vperm.xlu0 (!%p970_p5), %1203, %v565_v23   ;;  %v1217_v38 = vld [vmem:[#allocation9 + $0x30] sm:$0xff] (!%p970_p5)   ;;  %v1219_v40 = vld [vmem:[#allocation9 + $0x38] sm:$0xff] (!%p970_p5)  }
  0xc8   : > { %1045 = vmatpush3.bf16.msra.mxu0 %v1197_v7  ;;  %v972_v49 = vld [vmem:[%s1965_s5] ss:$0 sm:$0xff] (!%p970_p5) }
  0xc9   : > { %1046 = vmatprep.subr.bf16.mxu0 %v1461_v4 }
  0xcc   : > { %1047 = vmatpush3.bf16.msra.mxu0 %v1198_v8 }
  0xcd   : > { %1048 = vmatprep.subr.bf16.mxu0 %v1461_v4 }
  0xd0   : > { %1049 = vmatpush3.bf16.msra.mxu0 %v1199_v9 }
  0xd1   : > { %1050 = vmatprep.subr.bf16.mxu0 %v1461_v4 }
  0xd4   : > { %1051 = vmatpush3.bf16.msra.mxu0 %v1200_v10 }
  0xd5   : > { %1052 = vmatprep.subr.bf16.mxu0 %v1461_v4 }
  0xd8   : > { %1053 = vmatpush3.bf16.msra.mxu0 %v1201_v11 }
  0xd9   : > { %1016 = vmatprep.subr.bf16.mxu0 (!%p970_p5), %v1204_v24 }
  0xdb   : > { %1055 = vmatmul.mubr.bf16.vlgmr.msra.gmra.mrb[0].mxu0 %v1202_v12 }
  0xdc   : > { %1017 = vmatpush3.bf16.msra.mxu0 (!%p970_p5), %v1205_v25  ;;  %754 = vmatprep.mubr.bf16.mxu0 (!%p970_p5), %v1220_v35 }
  0xdd   : > { %1018 = vmatprep.subr.bf16.mxu0 (!%p970_p5), %v1206_v26 }
  0xe0   : > { %1019 = vmatpush3.bf16.msra.mxu0 (!%p970_p5), %v1207_v27 }
  0xe1   : > { %1020 = vmatprep.subr.bf16.mxu0 (!%p970_p5), %v1208_v28 }
  0xe4   : > { %1021 = vmatpush3.bf16.msra.mxu0 (!%p970_p5), %v1209_v29 }
  0xe5   : > { %1022 = vmatprep.subr.bf16.mxu0 (!%p970_p5), %v1210_v30 }
  0xe8   : > { %1023 = vmatpush3.bf16.msra.mxu0 (!%p970_p5), %v1211_v31 }
  0xe9   : > { %1024 = vmatprep.subr.bf16.mxu0 (!%p970_p5), %v1212_v32 }
  0xec   : > { %1025 = vmatpush3.bf16.msra.mxu0 (!%p970_p5), %v1213_v33 }
  0xed   : > { %1026 = vmatprep.subr.bf16.mxu0 (!%p970_p5), %v1214_v34 }
  0xf0   : > { %1027 = vmatpush3.bf16.msra.mxu0 (!%p970_p5), %v1215_v36 }
  0xf1   : > { %1028 = vmatprep.subr.bf16.mxu0 (!%p970_p5), %v1216_v37 }
  0xf4   : > { %1029 = vmatpush3.bf16.msra.mxu0 (!%p970_p5), %v1217_v38 }
  0xf5   : > { %1030 = vmatprep.subr.bf16.mxu0 (!%p970_p5), %v1218_v39 }
  0xf8   : > { %1031 = vmatpush3.bf16.msra.mxu0 (!%p970_p5), %v1219_v40 }
 0x142   : > { %v569_v41 = vpop.permute.xlu0 (!%p970_p5), %568 }
 0x146   : > { %v574_v44 = vpop.permute.xlu0 (!%p970_p5), %573 }
 0x1ad   : > { %561 = sbr.rel (%p970_p5) target bundleno = 671 (0x29f), region = 105 }
 0x1ae   : > { %v547_v14 = vpop.f32.mrb[0].mxu0 }
 0x1af   : > { %v554_v16 = vadd.f32 %v547_v14, %v439_v13  ;;  %v1056_v17 = vpop.f32.mrb[1].mxu0 }
 0x1b0   : > { %v550_v18 = vpop.f32.mrb[2].mxu0 }
 0x1b1   : > { %556 = vst [vmem:[#allocation2] sm:$0xff] %v554_v16  ;;  %v555_v19 = vadd.f32 %v550_v18, %v440_v15  ;;  %v1057_v20 = vpop.f32.mrb[3].mxu0 }
 0x1b3   : > { %557 = vst [vmem:[#allocation2 + $0x8] sm:$0xff] %v555_v19 }
 0x1b8   : > { %v562_v42 = vld [vmem:[#allocation2] sm:$0xff] }
 0x1b9   : > { %v576_v45 = vmul.f32 %v569_v41, %v562_v42 }
 0x1ba   : > { %v563_v43 = vld [vmem:[#allocation2 + $0x8] sm:$0xff] }
 0x1bb   : > { %v577_v46 = vmul.f32 %v574_v44, %v563_v43 }
 0x1bd   : > { %v578_v47 = vpack.c.bf16 %v577_v46, %v576_v45 }
 0x1bf   : > { %755 = vmatmul.mubr.bf16.vlgmr.msra.gmra.mrb[0].mxu0 %v578_v47 }
 0x292   : > { %v1032_v48 = vpop.f32.mrb[0].mxu0 }
 0x293   : > { %v1033_v50 = vpop.f32.mrb[1].mxu0 }
 0x294   : > { %v1034_v51 = vadd.f32 %v1033_v50, %v1032_v48  ;;  %v1035_v52 = vpop.f32.mrb[2].mxu0 }
 0x295   : > { %v1036_v53 = vpop.f32.mrb[3].mxu0 }
 0x296   : > { %v757_v54 = vadd.f32 %v1034_v51, %v972_v49  ;;  %v1037_v55 = vadd.f32 %v1036_v53, %v1035_v52 }
 0x298   : > { %v760_v56 = vadd.f32 %v1037_v55, %v972_v49  ;;  %v763_v57 = vmax.f32 %v757_v54, 0.0 }
 0x29a   : > { %v764_v58 = vmax.f32 %v760_v56, 0.0 }
 0x29c   : > { %v1005_v59 = vpack.c.bf16 %v764_v58, %v763_v57 }
 0x29e   : > { %1006 = vst [vmem:[%s421_s15] sm:$0xff] %v1005_v59  }
 0x29f PF: > { %s1966_s19 = sld [smem:[#allocation18_spill]]  ;;  %s1968_s29 = sld [smem:[#allocation25_spill]] }
 0x2a0   : > { %s1969_s12 = sld [smem:[#allocation29_spill]]  ;;  %s789_s16 = sshll.u32 %s421_s15, 4  ;;  %s1823_s16 = int_to_ptr.vmem [resolvable:$true] %s789_s16 }
 0x2a1   : > { %s1827_s13 = scalar_lea.sflag [#allocation6], %s373_s27  ;;  %s1305_s1 = scalar_lea.vmem %s1823_s16, 128 }
 0x2a2   : > { %p1306_p3 = scmp.ne.s32.totalorder %s1823_s16, %s1305_s1  ;;  %s1464_s30 = smov [#allocation10]  }
 0x2a3   : > { %s1309_s6 = sshll.u32 %s1464_s30, 4  ;;  %s1310_s6 = int_to_ptr.vmem [resolvable:$false] %s1309_s6 }
 0x2a4   : > { %s1311_s10 = scalar_lea.vmem %s1310_s6, 256  ;;  %p1312_p11 = scmp.lt.s32.totalorder %s1823_s16, %s1310_s6 }
 0x2a5   : > { %s1001_s14 = sshll.u32 %s1966_s19, 7  ;;  %p1970_p12 = scmp.ne.s32.totalorder %s1968_s29, 0 }
 0x2a6   : > { %s1819_s18 = scalar_lea.hbm %s1969_s12, %s1001_s14  ;;  %p1313_p4 = scmp.lt.s32.totalorder %s1311_s10, %s1305_s1 }
 0x2a7   : > { %p1307_p9 = pnand %p1306_p3, %p1970_p12 }
 0x2a8   : > { %p1314_p13 = por %p1313_p4, %p1312_p11 }
 0x2a9   : > { %p1308_p7 = pneg %p1307_p9 }
 0x2ab   : > { %p1315_p8 = pnand %p1314_p13, %p1308_p7 }
 0x2ad   : > { %1318 = shalt.err (!%p1315_p8)
}
 0x2ae   : > { %s1319_s27 = scalar_lea.hbm %s1819_s18, 128  ;;  %s1323_s11 = scalar_lea.hbm %s1969_s12, 2048 }
 0x2af   : > { %p1320_p0 = scmp.ne.s32.totalorder %s1819_s18, %s1319_s27  ;;  %p1324_p2 = scmp.lt.u32.totalorder %s1819_s18, %s1969_s12 }
 0x2b0   : > { %p1325_p1 = scmp.lt.u32.totalorder %s1323_s11, %s1319_s27  ;;  %p1327_p3 = scmp.lt.u32.totalorder %s1319_s27, %s1819_s18 }
 0x2b1   : > { %p1321_p10 = pnand %p1320_p0, %p1970_p12 }
 0x2b2   : > { %p1326_p5 = por %p1325_p1, %p1324_p2 }
 0x2b3   : > { %p1322_p6 = pneg %p1321_p10 }
 0x2b4   : > { %p1328_p9 = por %p1327_p3, %p1326_p5 }
 0x2b6   : > { %p1329_p7 = pnand %p1328_p9, %p1322_p6 }
 0x2b8   : > { %1332 = shalt.err (!%p1329_p7)
}
 0x2b9   : > { %s1465_s19 = smov 64   ;;  %s1466_s22 = smov 4  }
 0x2ba   : > { %1066 = dma.vmem_to_hbm [thread:$0]  (%p1970_p12), %s1823_s16, 128, %s1819_s18, %s1827_s13, %s1465_s19, %s1465_s19, %s1466_s22  }
 0x2bb PF: > { %s1971_s14 = sld [smem:[#allocation15_spill]]  ;;  %s1972_s20 = sld [smem:[#allocation26_spill]] }
 0x2bc   : > { %p1078_p11 = scmp.ge.s32.totalorder %s1451_s9, 2 }
 0x2c1   : > { %s804_s17 = sand.u32 1, %s1971_s14   ;;  %p1973_p4 = scmp.ne.s32.totalorder %s1972_s20, 0 }
 0x2c2   : > { %s805_s1 = scalar_lea.sflag [#allocation6], %s804_s17 }
 0x2c3   : > { %p1073_p13 = pnand %p1078_p11, %p1973_p4 }
 0x2c5   : > { %1398 = dma.done.wait (!%p1073_p13), %s805_s1, 128  }
 0x2c6   : > { %1400 = vsyncadd (!%p1073_p13), %s805_s1, 4294967168  ;;  %s25_s9 = sadd.s32 1, %s1451_s9   ;;  %s1975_s21 = sld [smem:[#allocation16_spill]] }
 0x2c7   : > { %p1856_p8 = scmp.ge.s32.totalorder %s25_s9, 34   ;;  %s1976_s29 = sld [smem:[#allocation23_spill]] }
 0x2c8   : > { %s1977_s18 = sld [smem:[#allocation21_spill]]  ;;  %s1978_s16 = sld [smem:[#allocation22_spill]] }
 0x2c9   : > { %s1979_s13 = sld [smem:[#allocation19_spill]]  ;;  %s1980_s6 = sld [smem:[#allocation20_spill]] }
 0x2ca   : > { %s1982_s22 = smov %s1411_s23  ;;  %s1984_s24 = smov %s1419_s25 }
 0x2cb   : > { %s1985_s25 = smov %s1423_s26  ;;  %s1987_s27 = smov %s1431_s28 }
 0x2cc   : > { %s1990_s30 = smov %s1447_s8  ;;  %24 = sbr.rel (!%p1856_p8) target bundleno = 16 (0x10), region = 166 }
 0x2cd   : > { %s1983_s23 = smov %s1976_s29  ;;  %s1989_s29 = smov %s1443_s7 }
 0x2ce   : > { %s1986_s26 = smov %s1977_s18  ;;  %s1988_s28 = smov %s1978_s16 }
 0x2cf   : > { %s1991_s7 = smov %s1979_s13  ;;  %s1992_s8 = smov %s1980_s6 }
 0x2d3   :  { %810 = vsyncpa [#allocation5], 1 }
 0x2d4   :  { %812 = vsyncpa [#allocation5 + $0x1], 1 }
 0x2d5   :  { %813 = vsyncpa [#allocation8], 1 }
 0x2d6   :  { %815 = vsyncpa [#allocation8 + $0x1], 1 }
 0x2d7   :  { %816 = vsyncpa [#allocation6], 1 }
 0x2d8   :  { %818 = vsyncpa [#allocation6 + $0x1], 1 }

</bundles_post_ra>
